<compile_context>
chip_gen: v7x
topology: tpu7x:2x2x1
jax: 0.10.0
libtpu: 0.0.40
codegen_flags: <defaults>
</compile_context>

<pallas_src>
import functools

import jax
import jax.numpy as jnp
from jax.experimental import pallas as pl
from jax.experimental.pallas import tpu as pltpu

HIGH = jax.lax.Precision.HIGHEST


def _round_up(v, m):
    return (v + m - 1) // m * m


# ----------------------------- Pallas kernels ------------------------------ #

def attn_kernel(ctx_ref, fcT_ref, s1_ref, t1_ref, headT_ref, headb_ref,
                attn_ref, *, n_sig):
    """Attention MLP on the pooled context; all four heads fused in one matmul.

    ctx_ref:   (B, C)              GAP'd input (computed by XLA in the wrapper)
    fcT_ref:   (C, hidden)         1x1 'fc' conv weight, transposed
    s1/t1:     (1, hidden)         inner BatchNorm folded to scale/shift (eval)
    headT_ref: (hidden, n_sig+K)   [fc_f | fc_s | fc_c | fc_w] weights, fused
    headb_ref: (1, n_sig+K)
    attn_ref:  (B, n_sig+K)        first n_sig columns sigmoid, last K softmax
    """
    ctx = ctx_ref[...]
    # bf16 operands, f32 accumulation (single MXU pass; no HIGHEST emulation)
    h = jnp.dot(ctx.astype(jnp.bfloat16), fcT_ref[...].astype(jnp.bfloat16),
                preferred_element_type=jnp.float32)
    h = h * s1_ref[...] + t1_ref[...]            # inner BN (eval), f32 VPU math
    h = jnp.maximum(h, 0.0)                      # ReLU
    a = jnp.dot(h.astype(jnp.bfloat16), headT_ref[...].astype(jnp.bfloat16),
                preferred_element_type=jnp.float32) + headb_ref[...]

    col = jax.lax.broadcasted_iota(jnp.int32, a.shape, dimension=1)
    is_soft = col >= n_sig                       # last K columns -> softmax head
    sig = jax.nn.sigmoid(a)
    logits = jnp.where(is_soft, a, jnp.float32(-1e30))
    m = jnp.max(logits, axis=-1, keepdims=True)
    e = jnp.where(is_soft, jnp.exp(a - m), 0.0)
    denom = jnp.sum(e, axis=-1, keepdims=True)
    # exact reciprocal keeps tight parity with the f32 reference;
    # pl.reciprocal(..., approx=True) is cheaper (EUP slot) if tolerance allows.
    soft = e * pl.reciprocal(denom, approx=False)
    attn_ref[...] = jnp.where(is_soft, soft, sig)


def dynconv_kernel(x_ref, w_ref, shift_ref, o_ref, *, taps):
    """Per-batch dynamic conv as kh*kw shifted matmuls (im2col stays in VMEM).

    x_ref:     (Cp, hw_pad)  bf16 channel/spatially padded, flattened activation
    w_ref:     (kk, c2, Cp)  bf16 per-tap dynamic weights (attention+BN folded)
    shift_ref: (c2, 1)       f32 per-row shift = BN_scale*dyn_bias + BN_shift
    o_ref:     (c2, width)   width = lane-padded Ho*Wp strip; the wrapper keeps
                             the first Ho*Wp columns (Wo valid columns per row).
    """
    width = o_ref.shape[-1]
    acc = jnp.zeros(o_ref.shape, jnp.float32)
    for t, sh in enumerate(taps):                # static unroll over kh*kw taps
        w_t = w_ref[t]                                   # (c2, Cp)   bf16
        x_t = x_ref[:, sh:sh + width]                    # (Cp, width) bf16
        acc = acc + jnp.dot(w_t, x_t, preferred_element_type=jnp.float32)
    y = acc + shift_ref[...]                      # dynamic bias + outer BN folded
    o_ref[...] = y * jax.nn.sigmoid(y)            # SiLU


# ------------------------------- wrapper ----------------------------------- #

def odconv_forward(x, p, *, k, stride, pad, dil, K, c2, groups=1):
    assert groups == 1, "only groups=1 implemented"   # TODO(synk): grouped conv
    assert stride == 1, "fused shifted-matmul path assumes stride=1"
    B, C, H, W = x.shape
    kh = kw = k
    kk = kh * kw
    Cg = C // groups

    # inner BN is skipped in the PyTorch forward when batch == 1
    if B > 1:
        s1, t1 = p['bn1_scale'], p['bn1_shift']
    else:
        s1 = jnp.ones_like(p['bn1_scale'])
        t1 = jnp.zeros_like(p['bn1_shift'])

    # ---- GAP in the wrapper (XLA reduce); only (B, C) enters the kernel ----
    ctx = x.mean(axis=(2, 3))

    # ---- Kernel 1: attention MLP (heads fused into a single matmul) ----
    n_sig = c2 + kk + Cg
    attn = pl.pallas_call(
        functools.partial(attn_kernel, n_sig=n_sig),
        out_shape=jax.ShapeDtypeStruct((B, n_sig + K), jnp.float32),
    )(ctx, p['fcT'], s1, t1, p['headT'], p['head_b'])
    attn_f = attn[:, :c2]
    attn_s = attn[:, c2:c2 + kk]
    attn_c = attn[:, c2 + kk:n_sig]
    attn_w = attn[:, n_sig:]

    # ---- factored dynamic-weight assembly (tiny tensors only) ----
    w_mix = jnp.einsum('bk,kocs->bocs', attn_w,
                       p['weight'].reshape(K, c2, Cg, kk), precision=HIGH)
    scale_bn = p['bn2_gamma'] * jax.lax.rsqrt(p['bn2_var'] + 1e-5)
    shift_bn = p['bn2_beta'] - p['bn2_mean'] * scale_bn
    w_dyn = (w_mix
             * (scale_bn[None, :] * attn_f)[:, :, None, None]  # fold BN scale+attn_f
             * attn_c[:, None, :, None]                        # per input channel
             * attn_s[:, None, None, :])                       # per kernel tap
    dyn_b = jnp.einsum('bk,ko->bo', attn_w, p['bias'], precision=HIGH)
    row_shift = scale_bn[None, :] * dyn_b + shift_bn[None, :]  # (B, c2)

    # taps-major weight layout; channels zero-padded to a sublane multiple (8)
    Cp = _round_up(Cg, 8)
    w_taps = jnp.transpose(w_dyn, (0, 3, 1, 2))                # (B, kk, c2, Cg)
    w_taps = jnp.pad(w_taps, ((0, 0), (0, 0), (0, 0), (0, Cp - Cg)))
    w_taps = w_taps.astype(jnp.bfloat16)          # bf16 operands into the kernel

    # ---- padded input, flattened spatially; read ONCE by the conv kernel ----
    Ho = (H + 2 * pad - dil * (kh - 1) - 1) // stride + 1
    Wo = (W + 2 * pad - dil * (kw - 1) - 1) // stride + 1
    Hp, Wp = H + 2 * pad, W + 2 * pad
    lout = Ho * Wp                                   # strip; valid cols = Wo/row
    lout_pad = _round_up(lout, 128)                  # lane-dense output strip
    max_tap = dil * (kh - 1) * Wp + dil * (kw - 1)
    hw_pad = _round_up(max(Hp * Wp, max_tap + lout_pad), 128)
    xp = jnp.pad(x, ((0, 0), (0, Cp - C), (pad, pad), (pad, pad)))
    xf = xp.reshape(B, Cp, Hp * Wp)
    xf = jnp.pad(xf, ((0, 0), (0, 0), (0, hw_pad - Hp * Wp)))
    xf = xf.astype(jnp.bfloat16)                  # halve activation HBM traffic
    taps = tuple(i * dil * Wp + j * dil for i in range(kh) for j in range(kw))

    # ---- Kernel 2: per-batch dynamic conv + folded BN + SiLU ----
    out = pl.pallas_call(
        functools.partial(dynconv_kernel, taps=taps),
        out_shape=jax.ShapeDtypeStruct((B, c2, lout_pad), jnp.float32),
        grid=(B,),
        in_specs=[
            pl.BlockSpec((None, Cp, hw_pad), lambda b: (b, 0, 0)),
            pl.BlockSpec((None, kk, c2, Cp), lambda b: (b, 0, 0, 0)),
            pl.BlockSpec((None, c2, 1), lambda b: (b, 0, 0)),
        ],
        out_specs=pl.BlockSpec((None, c2, lout_pad), lambda b: (b, 0, 0)),
        compiler_params=pltpu.CompilerParams(dimension_semantics=("parallel",)),
    )(xf, w_taps, row_shift.reshape(B, c2, 1))

    return out[:, :, :lout].reshape(B, c2, Ho, Wp)[:, :, :, :Wo]


# --------------------------- parameter init -------------------------------- #

def init_params(key, c1, c2, k, K, groups=1):
    hidden = max(int(c1 * (1.0 / 16)), 16)
    kh = kw = k
    keys = jax.random.split(key, 20)

    def rnd(kr, shape, s=0.1):
        return jax.random.normal(kr, shape, jnp.float32) * s

    fan_out = kh * kw * c2 // groups
    p = {}
    p['weight'] = jax.random.normal(keys[0], (K, c2, c1 // groups, kh, kw),
                                    jnp.float32) * (2.0 / fan_out) ** 0.5
    p['bias'] = rnd(keys[1], (K, c2))
    # fc: Conv2d(c1, hidden, 1, bias=False) -> weight (hidden, c1, 1, 1); transposed
    p['fcT'] = rnd(keys[2], (c1, hidden), 0.3)
    # inner BatchNorm2d(hidden), eval params folded to scale/shift
    g1 = 1.0 + rnd(keys[3], (1, hidden), 0.05)
    b1 = rnd(keys[4], (1, hidden), 0.05)
    m1 = rnd(keys[5], (1, hidden), 0.05)
    v1 = 1.0 + jnp.abs(rnd(keys[6], (1, hidden), 0.05))
    p['bn1_scale'] = g1 / jnp.sqrt(v1 + 1e-5)
    p['bn1_shift'] = b1 - m1 * p['bn1_scale']
    # attention heads (Linear weights pre-transposed: (hidden, out))
    p['wfT'] = rnd(keys[7], (hidden, c2), 0.3);            p['bf'] = rnd(keys[8], (1, c2))
    p['wsT'] = rnd(keys[9], (hidden, kh * kw), 0.3);       p['bs'] = rnd(keys[10], (1, kh * kw))
    p['wcT'] = rnd(keys[11], (hidden, c1 // groups), 0.3); p['bc'] = rnd(keys[12], (1, c1 // groups))
    p['wwT'] = rnd(keys[13], (hidden, K), 0.3);            p['bw'] = rnd(keys[14], (1, K))
    # fused head (f | s | c | w) for the single-matmul attention kernel
    p['headT'] = jnp.concatenate([p['wfT'], p['wsT'], p['wcT'], p['wwT']], axis=1)
    p['head_b'] = jnp.concatenate([p['bf'], p['bs'], p['bc'], p['bw']], axis=1)
    # outer BatchNorm2d(c2), eval params
    p['bn2_gamma'] = 1.0 + rnd(keys[15], (c2,), 0.05)
    p['bn2_beta'] = rnd(keys[16], (c2,), 0.05)
    p['bn2_mean'] = rnd(keys[17], (c2,), 0.05)
    p['bn2_var'] = 1.0 + jnp.abs(rnd(keys[18], (c2,), 0.05))
    return p


# ---------------------------- pure-JAX reference ---------------------------- #

def reference_forward(x, p, *, k, stride, pad, dil, K, c2, groups=1):
    B, C, H, W = x.shape
    kh = kw = k
    ctx = x.mean(axis=(2, 3))
    h = jnp.dot(ctx, p['fcT'], precision=HIGH)
    if B > 1:
        h = h * p['bn1_scale'] + p['bn1_shift']
    h = jnp.maximum(h, 0.0)
    attn_f = jax.nn.sigmoid(jnp.dot(h, p['wfT'], precision=HIGH) + p['bf'])
    attn_s = jax.nn.sigmoid(jnp.dot(h, p['wsT'], precision=HIGH) + p['bs'])
    attn_c = jax.nn.sigmoid(jnp.dot(h, p['wcT'], precision=HIGH) + p['bc'])
    attn_w = jax.nn.softmax(jnp.dot(h, p['wwT'], precision=HIGH) + p['bw'], axis=-1)
    attn = attn_f[:, None, :, None, None, None]
    attn = attn * attn_s.reshape(B, 1, 1, 1, kh, kw)
    attn = attn * attn_c.reshape(B, 1, 1, C // groups, 1, 1)
    attn = attn * attn_w.reshape(B, K, 1, 1, 1, 1)
    dyn_w = (attn * p['weight'][None]).sum(axis=1)          # (B, c2, C//g, kh, kw)
    dyn_b = attn_w @ p['bias']                              # (B, c2)

    def conv_one(xi, wi):
        return jax.lax.conv_general_dilated(
            xi[None], wi, (stride, stride), [(pad, pad), (pad, pad)],
            rhs_dilation=(dil, dil),
            dimension_numbers=('NCHW', 'OIHW', 'NCHW'),
            precision=HIGH)[0]

    y = jax.vmap(conv_one)(x, dyn_w) + dyn_b[:, :, None, None]
    scale = p['bn2_gamma'] / jnp.sqrt(p['bn2_var'] + 1e-5)
    shift = p['bn2_beta'] - p['bn2_mean'] * scale
    y = y * scale[None, :, None, None] + shift[None, :, None, None]
    return y * jax.nn.sigmoid(y)


# ----------------------------------- main ----------------------------------- #

def _run_case(seed, *, B, c1, c2, H, W, k, K, g=1):
    pad = k // 2  # autopad
    s, dil = 1, 1
    key = jax.random.PRNGKey(seed)
    kx, kp = jax.random.split(key)
    x = jax.random.normal(kx, (B, c1, H, W), jnp.float32)
    params = init_params(kp, c1, c2, k, K, groups=g)

    out = odconv_forward(x, params, k=k, stride=s, pad=pad, dil=dil,
                         K=K, c2=c2, groups=g)
    out = jax.block_until_ready(out)

    ref = reference_forward(x, params, k=k, stride=s, pad=pad, dil=dil,
                            K=K, c2=c2, groups=g)
    ref = jax.block_until_ready(ref)

    assert out.shape == (B, c2, H, W), out.shape
    # bf16-MXU kernel vs f32 (HIGHEST) reference
    assert jnp.allclose(out, ref, rtol=5e-3, atol=5e-3), (
        float(jnp.max(jnp.abs(out - ref))))


if __name__ == "__main__":
    # General ODConv_3rd: c1=4, c2=8, k=3, s=1, kerNums=2 on x: (2, 4, 16, 16)
    _run_case(0, B=2, c1=4, c2=8, H=16, W=16, k=3, K=2)
    # Exact ABFFSPPF usage: ODConv_3rd(c2, c2) -> k=1, s=1, kerNums=1, c1=c2=8
    _run_case(0, B=2, c1=8, c2=8, H=16, W=16, k=1, K=1)
    print("KERNEL_OK")
</pallas_src>

<mosaic_0001>
module attributes {stable_mosaic.version = 11 : i64} {
  func.func @attn_kernel(%arg0: memref<2x4xf32, #tpu.memory_space<vmem>>, %arg1: memref<4x16xf32, #tpu.memory_space<vmem>>, %arg2: memref<1x16xf32, #tpu.memory_space<vmem>>, %arg3: memref<1x16xf32, #tpu.memory_space<vmem>>, %arg4: memref<16x23xf32, #tpu.memory_space<vmem>>, %arg5: memref<1x23xf32, #tpu.memory_space<vmem>>, %arg6: memref<2x23xf32, #tpu.memory_space<vmem>>) attributes {dimension_semantics = [], scalar_prefetch = 0 : i64, scratch_operands = 0 : i64, tpu.core_type = #tpu.core_type<tc>} {
    %c0 = arith.constant 0 : index
    %c0_0 = arith.constant 0 : index
    %0 = vector.load %arg0[%c0, %c0_0] : memref<2x4xf32, #tpu.memory_space<vmem>>, vector<2x4xf32>
    %1 = arith.truncf %0 : vector<2x4xf32> to vector<2x4xbf16>
    %c0_1 = arith.constant 0 : index
    %c0_2 = arith.constant 0 : index
    %2 = vector.load %arg1[%c0_1, %c0_2] : memref<4x16xf32, #tpu.memory_space<vmem>>, vector<4x16xf32>
    %3 = arith.truncf %2 : vector<4x16xf32> to vector<4x16xbf16>
    %cst = arith.constant dense<0.000000e+00> : vector<2x16xf32>
    %4 = tpu.matmul %1, %3, %cst {dimension_numbers = #tpu.dot_dimension_numbers<[1], [0], [0], [1], [0, 0, 1, 1], [], []>} : vector<2x4xbf16>, vector<4x16xbf16>, vector<2x16xf32> -> vector<2x16xf32>
    %c0_3 = arith.constant 0 : index
    %c0_4 = arith.constant 0 : index
    %5 = vector.load %arg2[%c0_3, %c0_4] : memref<1x16xf32, #tpu.memory_space<vmem>>, vector<1x16xf32>
    %6 = vector.broadcast %5 : vector<1x16xf32> to vector<2x16xf32>
    %7 = arith.mulf %4, %6 : vector<2x16xf32>
    %c0_5 = arith.constant 0 : index
    %c0_6 = arith.constant 0 : index
    %8 = vector.load %arg3[%c0_5, %c0_6] : memref<1x16xf32, #tpu.memory_space<vmem>>, vector<1x16xf32>
    %9 = vector.broadcast %8 : vector<1x16xf32> to vector<2x16xf32>
    %10 = arith.addf %7, %9 : vector<2x16xf32>
    %cst_7 = arith.constant 0.000000e+00 : f32
    %11 = vector.broadcast %cst_7 : f32 to vector<2x16xf32>
    %12 = arith.maximumf %10, %11 : vector<2x16xf32>
    %13 = arith.truncf %12 : vector<2x16xf32> to vector<2x16xbf16>
    %c0_8 = arith.constant 0 : index
    %c0_9 = arith.constant 0 : index
    %14 = vector.load %arg4[%c0_8, %c0_9] : memref<16x23xf32, #tpu.memory_space<vmem>>, vector<16x23xf32>
    %15 = arith.truncf %14 : vector<16x23xf32> to vector<16x23xbf16>
    %cst_10 = arith.constant dense<0.000000e+00> : vector<2x23xf32>
    %16 = tpu.matmul %13, %15, %cst_10 {dimension_numbers = #tpu.dot_dimension_numbers<[1], [0], [0], [1], [0, 0, 1, 1], [], []>} : vector<2x16xbf16>, vector<16x23xbf16>, vector<2x23xf32> -> vector<2x23xf32>
    %c0_11 = arith.constant 0 : index
    %c0_12 = arith.constant 0 : index
    %17 = vector.load %arg5[%c0_11, %c0_12] : memref<1x23xf32, #tpu.memory_space<vmem>>, vector<1x23xf32>
    %18 = vector.broadcast %17 : vector<1x23xf32> to vector<2x23xf32>
    %19 = arith.addf %16, %18 : vector<2x23xf32>
    %20 = tpu.iota {dimensions = array<i32: 1>} : vector<2x23xi32>
    %c21_i32 = arith.constant 21 : i32
    %21 = vector.broadcast %c21_i32 : i32 to vector<2x23xi32>
    %22 = arith.cmpi sge, %20, %21 : vector<2x23xi32>
    %23 = arith.negf %19 : vector<2x23xf32>
    %24 = math.exp %23 : vector<2x23xf32>
    %cst_13 = arith.constant 1.000000e+00 : f32
    %25 = vector.broadcast %cst_13 : f32 to vector<2x23xf32>
    %26 = arith.addf %25, %24 : vector<2x23xf32>
    %27 = arith.divf %25, %26 : vector<2x23xf32>
    %cst_14 = arith.constant -1.000000e+30 : f32
    %28 = vector.broadcast %cst_14 : f32 to vector<2x23xf32>
    %29 = arith.select %22, %19, %28 : vector<2x23xi1>, vector<2x23xf32>
    %cst_15 = arith.constant dense<0xFF800000> : vector<2xf32>
    %30 = vector.multi_reduction <maximumf>, %29, %cst_15 [1] : vector<2x23xf32> to vector<2xf32>
    %31 = vector.shape_cast %30 : vector<2xf32> to vector<2x1xf32>
    %32 = vector.broadcast %31 : vector<2x1xf32> to vector<2x23xf32>
    %33 = arith.subf %19, %32 : vector<2x23xf32>
    %34 = math.exp %33 : vector<2x23xf32>
    %cst_16 = arith.constant 0.000000e+00 : f32
    %35 = vector.broadcast %cst_16 : f32 to vector<2x23xf32>
    %36 = arith.select %22, %34, %35 : vector<2x23xi1>, vector<2x23xf32>
    %cst_17 = arith.constant dense<0.000000e+00> : vector<2xf32>
    %37 = vector.multi_reduction <add>, %36, %cst_17 [1] : vector<2x23xf32> to vector<2xf32>
    %38 = vector.shape_cast %37 : vector<2xf32> to vector<2x1xf32>
    %39 = tpu.reciprocal %38 : vector<2x1xf32> -> vector<2x1xf32>
    %40 = vector.broadcast %39 : vector<2x1xf32> to vector<2x23xf32>
    %41 = arith.mulf %36, %40 : vector<2x23xf32>
    %42 = arith.select %22, %41, %27 : vector<2x23xi1>, vector<2x23xf32>
    %c0_18 = arith.constant 0 : index
    %c0_19 = arith.constant 0 : index
    %43 = vector.load %arg6[%c0_18, %c0_19] : memref<2x23xf32, #tpu.memory_space<vmem>>, vector<2x23xf32>
    tpu.vector_store %arg6[%c0_18, %c0_19], %42 {strides = array<i32>} : memref<2x23xf32, #tpu.memory_space<vmem>>, vector<2x23xf32>,
    return
  }
}

</mosaic_0001>

<bundles_post_ra>
// kernel: tpu_custom_call.1
= control target key start
LH: loop header
LB: loop body
LE: loop exit
PB: predicated region body
PF: predicated region fallthrough
CT: control target
= control target key end

     0   :  { %11 = vsyncpa [#allocation3], 0  ;;  %s465_s0 = inlined_call_operand.hbm [shape: f32[2,4], index: 0, kind: input, shape index: {}]   ;;  %s466_s1 = inlined_call_operand.hbm [shape: f32[4,16], index: 1, kind: input, shape index: {}]   ;;  %s467_s2 = inlined_call_operand.vmem [shape: f32[1,16], index: 2, kind: input, shape index: {}]   ;;  %s468_s3 = inlined_call_operand.vmem [shape: f32[1,16], index: 3, kind: input, shape index: {}]   ;;  %s469_s4 = inlined_call_operand.hbm [shape: f32[16,23], index: 4, kind: input, shape index: {}]   ;;  %s470_s5 = inlined_call_operand.vmem [shape: f32[1,23], index: 5, kind: input, shape index: {}]   ;;  %s471_s6 = inlined_call_operand.hbm [shape: f32[2,23], index: 6, kind: output, shape index: {}]  }
   0x1   :  { %12 = vsyncpa [#allocation6], 0 }
   0x2   :  { %13 = vsyncpa [#allocation4], 0  ;;  %s359_s21 = smov [#allocation5]   ;;  %s360_s23 = smov [#allocation2]  }
   0x3   :  { %s30_s22 = sshll.u32 %s359_s21, 4  ;;  %s20_s24 = sshll.u32 %s360_s23, 4  ;;  %s31_s22 = int_to_ptr.vmem [resolvable:$true] %s30_s22  ;;  %s21_s24 = int_to_ptr.vmem [resolvable:$true] %s20_s24 }
   0x4   :  { %s265_s27 = scalar_lea.hbm %s466_s1, 64 }
   0x5   :  { %p266_p0 = scmp.ne.s32.totalorder %s466_s1, %s265_s27  ;;  %p269_p1 = scmp.lt.u32.totalorder %s265_s27, %s466_s1 }
   0x7   :  { %p271_p2 = pnand %p269_p1, %p266_p0 }
   0x9   :  { %274 = shalt.err (!%p271_p2)
}
   0xa   :  { %s275_s8 = scalar_lea.vmem %s31_s22, 64  ;;  %p280_p4 = scmp.lt.s32.totalorder %s31_s22, %s31_s22 }
   0xb   :  { %p276_p3 = scmp.ne.s32.totalorder %s31_s22, %s275_s8  ;;  %p281_p5 = scmp.lt.s32.totalorder %s275_s8, %s275_s8 }
   0xd   :  { %p282_p6 = por %p281_p5, %p280_p4 }
   0xf   :  { %p283_p7 = pnand %p282_p6, %p276_p3 }
  0x11   :  { %286 = shalt.err (!%p283_p7)
}
  0x12   :  { %33 = dma.hbm_to_vmem [thread:$0]  %s466_s1, 64, %s31_s22, [#allocation6]  }
  0x13   :  { %s287_s13 = scalar_lea.hbm %s465_s0, 32 }
  0x14   :  { %p288_p8 = scmp.ne.s32.totalorder %s465_s0, %s287_s13  ;;  %p291_p9 = scmp.lt.u32.totalorder %s287_s13, %s465_s0 }
  0x16   :  { %p293_p10 = pnand %p291_p9, %p288_p8 }
  0x18   :  { %296 = shalt.err (!%p293_p10)
}
  0x19   :  { %s297_s18 = scalar_lea.vmem %s21_s24, 32  ;;  %p302_p12 = scmp.lt.s32.totalorder %s21_s24, %s21_s24 }
  0x1a   :  { %p298_p11 = scmp.ne.s32.totalorder %s21_s24, %s297_s18  ;;  %p303_p13 = scmp.lt.s32.totalorder %s297_s18, %s297_s18 }
  0x1c   :  { %p304_p0 = por %p303_p13, %p302_p12 }
  0x1e   :  { %p305_p1 = pnand %p304_p0, %p298_p11 }
  0x20   :  { %308 = shalt.err (!%p305_p1)
}
  0x21   :  { %23 = dma.hbm_to_vmem [thread:$0]  %s465_s0, 32, %s21_s24, [#allocation3]  }
  0x22   :  { %s361_s20 = smov [#allocation7]   ;;  %s309_s25 = scalar_lea.hbm %s469_s4, 256 }
  0x23   :  { %s43_s21 = sshll.u32 %s361_s20, 4  ;;  %p310_p2 = scmp.ne.s32.totalorder %s469_s4, %s309_s25  ;;  %s44_s21 = int_to_ptr.vmem [resolvable:$true] %s43_s21 }
  0x24   :  { %p313_p3 = scmp.lt.u32.totalorder %s309_s25, %s469_s4 }
  0x26   :  { %p315_p4 = pnand %p313_p3, %p310_p2 }
  0x28   :  { %318 = shalt.err (!%p315_p4)
}
  0x29   :  { %s319_s30 = scalar_lea.vmem %s44_s21, 256  ;;  %p324_p6 = scmp.lt.s32.totalorder %s44_s21, %s44_s21 }
  0x2a   :  { %p320_p5 = scmp.ne.s32.totalorder %s44_s21, %s319_s30  ;;  %p325_p7 = scmp.lt.s32.totalorder %s319_s30, %s319_s30 }
  0x2c   :  { %p326_p8 = por %p325_p7, %p324_p6 }
  0x2e   :  { %p327_p9 = pnand %p326_p8, %p320_p5 }
  0x30   :  { %330 = shalt.err (!%p327_p9)
}
  0x31   :  { %s362_s0 = smov 128   ;;  %s363_s24 = smov 8  }
  0x32   :  { %49 = dma.hbm_to_vmem [thread:$0]  %s469_s4, 256, %s44_s21, [#allocation6], %s362_s0, %s362_s0, %s363_s24  }
  0x33   :  { %353 = dma.done.wait [#allocation3], 32  }
  0x34   :  { %354 = vsyncadd [#allocation3], 4294967264 }
  0x35   :  { %355 = dma.done.wait [#allocation6], 320  }
  0x36   :  { %356 = vsyncadd [#allocation6], 4294966976  ;;  %v364_v0 = vmov 0.0   ;;  %vm365_vm0 = vmmov 0   ;;  %v64_v1 = vld [vmem:[#allocation5] sm:$0xf]  ;;  %v186_v19 = vlaneseq }
  0x37   :  { %237 = vmatprep.subr.bf16.mxu0 %v364_v0  ;;  %239 = vmatprep.mubr.msk.bf16.mxu0 %vm365_vm0, %v364_v0  ;;  %vm70_vm1 = vcmask 1041408   ;;  %v62_v2 = vld [vmem:[#allocation2] sm:$0x3]  ;;  %v65_v3 = vpack.c.bf16 %v64_v1, %v64_v1  ;;  %vm66_vm2 = vcmask 31744   ;;  %v132_v6 = vld [vmem:[#allocation7] sm:$0xff]  ;;  %v133_v7 = vld [vmem:[#allocation7 + $0x8] sm:$0xff] }
  0x38   :  { %243 = vmatprep.subr.bf16.mxu1 %v364_v0  ;;  %245 = vmatprep.mubr.msk.bf16.mxu1 %vm365_vm0, %v364_v0  ;;  %v63_v5 = vpack.c.bf16 %v62_v2, %v62_v2  ;;  %v134_v8 = vpack.c.bf16 %v133_v7, %v132_v6  ;;  %v228_v9 = vld [vmem:[%s467_s2] ss:$0 sm:$0xff]  ;;  %vm142_vm3 = vcmask 130048   ;;  %v187_v20 = vand.u32 127, %v186_v19  ;;  %s366_s2 = smov [#allocation8]  }
  0x39   :  { %v72_v4 = vsel %vm70_vm1, %v65_v3, 0  ;;  %v229_v11 = vld [vmem:[%s468_s3] ss:$0 sm:$0xff]  ;;  %vm196_vm5 = vcmask 181248   ;;  %s217_s3 = sshll.u32 %s366_s2, 4  ;;  %s218_s3 = int_to_ptr.vmem [resolvable:$true] %s217_s3 }
  0x3a   :  { %238 = vmatpush3.bf16.msra.mxu0 %v72_v4  ;;  %244 = vmatpush3.bf16.msra.mxu1 %v134_v8  ;;  %v230_v21 = vld [vmem:[%s470_s5] ss:$0 sm:$0xff]  ;;  %vm188_vm4 = vcmp.ge.s32.totalorder %v187_v20, 21  ;;  %s331_s5 = scalar_lea.vmem %s218_s3, 32  ;;  %p336_p11 = scmp.lt.s32.totalorder %s218_s3, %s218_s3 }
  0x3b   :  { %p332_p10 = scmp.ne.s32.totalorder %s218_s3, %s331_s5  ;;  %p337_p12 = scmp.lt.s32.totalorder %s331_s5, %s331_s5 }
  0x3d   :  { %240 = vmatmul.mubr.msk.bf16.vlgmr.msra.gmra.mrb[0].mxu0 %vm66_vm2, %v63_v5  ;;  %p338_p13 = por %p337_p12, %p336_p11 }
  0x3f   :  { %p339_p0 = pnand %p338_p13, %p332_p10 }
 0x110   :  { %v108_v10 = vpop.f32.mrb[0].mxu0 }
 0x111   :  { %v121_v12 = vmul.f32 %v228_v9, %v108_v10  ;;  %v241_v13 = vpop.f32.mrb[1].mxu0 }
 0x112   :  { %v111_v14 = vpop.f32.mrb[2].mxu0 }
 0x113   :  { %v129_v15 = vadd.f32 %v229_v11, %v121_v12  ;;  %v242_v16 = vpop.f32.mrb[3].mxu0 }
 0x115   :  { %v130_v17 = vmax.f32 %v129_v15, 0.0 }
 0x117   :  { %v131_v18 = vpack.c.bf16 %v130_v17, %v130_v17 }
 0x119   :  { %246 = vmatmul.mubr.msk.bf16.vlgmr.msra.gmra.mrb[0].mxu1 %vm142_vm3, %v131_v18 }
 0x1ec   :  { %v180_v22 = vpop.f32.mrb[0].mxu1 }
 0x1ed   :  { %v181_v23 = vadd.f32 %v230_v21, %v180_v22  ;;  %v247_v24 = vpop.f32.mrb[1].mxu1 }
 0x1ee   :  { %v183_v25 = vpop.f32.mrb[2].mxu1 }
 0x1ef   :  { %v248_v26 = vpop.f32.mrb[3].mxu1  ;;  %v195_v27 = vsel %vm188_vm4, %v181_v23, -1e+30  ;;  %v232_v35 = vmul.f32 -1.442695, %v181_v23 }
 0x1f0   :  { %v197_v28 = vsel %vm196_vm5, %v195_v27, -inf }
 0x1f1   :  { %198 = vmax.xlane.f32.xlu0 %v197_v28 }
 0x27e   :  { %v199_v29 = vpop.xlane.xlu0 %198 }
 0x27f   :  { %v200_v30 = vsub.f32 %v181_v23, %v199_v29 }
 0x281   :  { %v201_v31 = vmul.f32 1.442695, %v200_v30 }
 0x283   :  { %257 = vpow2.f32 %v201_v31 }
 0x284   :  { %259 = vpow2.f32 %v232_v35 }
 0x28d   :  { %v258_v32 = vpop.eup %257 }
 0x28e   :  { %v203_v33 = vsel %vm188_vm4, %v258_v32, 0.0  ;;  %v260_v36 = vpop.eup %259 }
 0x28f   :  { %v204_v34 = vsel %vm196_vm5, %v203_v33, 0.0  ;;  %v192_v37 = vadd.f32 1.0, %v260_v36 }
 0x290   :  { %205 = vadd.xlane.f32.xlu0 %v204_v34 }
 0x31d   :  { %v206_v38 = vpop.xlane.xlu0 %205 }
 0x31e   :  { %261 = vrcp.f32 %v206_v38 }
 0x31f   :  { %263 = vrcp.f32 %v192_v37 }
 0x328   :  { %v262_v39 = vpop.eup %261 }
 0x329   :  { %v208_v40 = vmul.f32 %v262_v39, %v203_v33  ;;  %v264_v41 = vpop.eup %263 }
 0x32b   :  { %v209_v42 = vsel %vm188_vm4, %v208_v40, %v264_v41 }
 0x32c   :  { %210 = vst.msk [vmem:[#allocation8] sm:$0x3] %vm196_vm5, %v209_v42 }
 0x32d   :  { %342 = shalt.err (!%p339_p0)
}
 0x32e   :  { %s343_s16 = scalar_lea.hbm %s471_s6, 32 }
 0x32f   :  { %p344_p1 = scmp.ne.s32.totalorder %s471_s6, %s343_s16  ;;  %p347_p2 = scmp.lt.u32.totalorder %s343_s16, %s471_s6 }
 0x331   :  { %p349_p3 = pnand %p347_p2, %p344_p1 }
 0x333   :  { %352 = shalt.err (!%p349_p3)
}
 0x334   :  { %220 = dma.vmem_to_hbm [thread:$0]  %s218_s3, 32, %s471_s6, [#allocation4]  }
 0x335   :  { %357 = dma.done.wait [#allocation4], 32  }
 0x336   :  { %358 = vsyncadd [#allocation4], 4294967264 }
 0x337   :  { %224 = vsyncpa [#allocation3], 1 }
 0x338   :  { %225 = vsyncpa [#allocation6], 1 }
 0x339   :  { %226 = vsyncpa [#allocation4], 1 }

</bundles_post_ra>
